<compile_context>
chip_gen: v5e
topology: v5e:2x2
jax: 0.10.0
libtpu: 0.0.40
codegen_flags: <defaults>
</compile_context>

<pallas_src>
import warnings
from functools import partial

import jax
import jax.numpy as jnp
import numpy as np
from jax.experimental import pallas as pl
from jax.experimental.pallas import tpu as pltpu

# Donation of tiny/padded debug inputs may be unusable; that is expected and
# harmless for this debug-only path — silence the advisory warning.
warnings.filterwarnings("ignore", message="Some donated buffers were not usable")

_LANES = 128                          # vreg lane width (minimum lane-dense width)
_MAX_LANES = 4096                     # cap on slab width
_TARGET_BLOCK_BYTES = 2 * 1024 * 1024  # ~2 MiB per block buffer (good on v5e..v7x)


# ----------------------------------------------------------------------------
# Pallas kernel: identity pass over one lane-dense tile.
# (The ControlNot module performs NO compute; this kernel exists only to
#  exercise the Pallas path on TPU and is never called from forward().)
# ----------------------------------------------------------------------------
def _touch_kernel(x_ref, o_ref):
    # Straight VMEM copy of the current (tile_rows, lanes) block.
    o_ref[...] = x_ref[...]


def _choose_lanes(total: int) -> int:
    """Largest power-of-two multiple of 128 that divides `total`, capped."""
    lanes = _LANES
    while lanes * 2 <= _MAX_LANES and total % (lanes * 2) == 0:
        lanes *= 2
    return lanes


def _choose_tile_rows(rows: int, lanes: int, itemsize: int) -> int:
    """Rows per block targeting ~2 MiB; multiple of 8 unless full-extent."""
    target_rows = max(8, _TARGET_BLOCK_BYTES // (lanes * itemsize))
    if rows <= target_rows:
        return rows                      # full extent (always layout-legal)
    return max(8, (target_rows // 8) * 8)  # sublane-aligned streaming tile


@partial(jax.jit, donate_argnums=0)
def pallas_touch(x: jax.Array) -> jax.Array:
    """Debug-only: streams x through a tiled, lane-dense Pallas identity kernel.

    Not part of ControlNot.forward (which launches zero kernels).  The input
    is DONATED: do not read the caller's array after this call.
    """
    orig_shape = x.shape
    total = x.size

    # Flatten; pad to a multiple of 128 so every load/store is lane-dense
    # (unmasked vst, 128-wide DMA rows) even for awkward element counts.
    flat = x.reshape(total)
    pad = (-total) % _LANES
    if pad:
        flat = jnp.pad(flat, (0, pad))
    padded_total = total + pad

    lanes = _choose_lanes(padded_total)
    rows = padded_total // lanes
    x2d = flat.reshape(rows, lanes)

    itemsize = x2d.dtype.itemsize
    tile_rows = _choose_tile_rows(rows, lanes, itemsize)
    grid = (pl.cdiv(rows, tile_rows),)

    # VMEM budget: in + out, double-buffered = 4x block bytes, plus headroom.
    block_bytes = tile_rows * lanes * itemsize
    vmem_limit = int(min(32 << 20, max(4 << 20, 4 * block_bytes + (1 << 20))))

    out2d = pl.pallas_call(
        _touch_kernel,
        out_shape=jax.ShapeDtypeStruct((rows, lanes), x2d.dtype),
        grid=grid,
        in_specs=[pl.BlockSpec((tile_rows, lanes), lambda i: (i, 0))],
        out_specs=pl.BlockSpec((tile_rows, lanes), lambda i: (i, 0)),
        # Alias the (donated) input HBM buffer as the output — no second
        # allocation at the custom-call level.
        input_output_aliases={0: 0},
        compiler_params=pltpu.CompilerParams(
            # Row axis is "parallel": with >= 2 blocks (any array >= ~4 MiB)
            # both v7x TensorCores stream DMAs; no-op on v5e/v6e (1 TC).
            dimension_semantics=("parallel",),
            vmem_limit_bytes=vmem_limit,
        ),
    )(x2d)

    out_flat = out2d.reshape(padded_total)
    if pad:
        out_flat = out_flat[:total]
    return out_flat.reshape(orig_shape)


# ----------------------------------------------------------------------------
# ControlNot module equivalent.
# ----------------------------------------------------------------------------
class ControlNot:
    """JAX/Pallas port of the PyTorch ControlNot module (no parameters)."""

    def __init__(self, preload: bool = True):
        # Original __init__ declares no parameters; nothing to initialize.
        pass

    def be_half(self) -> bool:
        return True

    def on_cuda(self) -> bool:
        return True

    def forward(self, x, hint, timesteps, context, y):
        # Exact semantics of the PyTorch module: ignore all inputs, return [].
        # No pallas_call here — zero HBM traffic, zero launch overhead.
        return []

    __call__ = forward


if __name__ == "__main__":
    key = jax.random.PRNGKey(0)
    k_x, k_hint, k_ctx, k_y = jax.random.split(key, 4)

    # Small shapes consistent with an SDXL-style ControlNet interface.
    x = jax.random.normal(k_x, (2, 4, 16, 16), dtype=jnp.float32)        # NCHW latent
    hint = jax.random.normal(k_hint, (2, 3, 16, 16), dtype=jnp.float32)  # NCHW hint image
    timesteps = jnp.arange(2, dtype=jnp.int32)                           # (N,)
    context = jax.random.normal(k_ctx, (2, 8, 32), dtype=jnp.float32)    # (N, seq, hidden)
    y = jax.random.normal(k_y, (2, 32), dtype=jnp.float32)               # (N, hidden)

    # --- Debug-only Pallas exercise (never part of forward). ------------------
    # pallas_touch donates its argument, so snapshot to host BEFORE the call
    # and never read the original device buffer afterwards.
    x_host = np.asarray(jax.device_get(x))
    touched = pallas_touch(x)                 # lane-aligned path (2048 elems)
    jax.block_until_ready(touched)
    assert touched.shape == x_host.shape and touched.dtype == jnp.float32
    assert np.allclose(np.asarray(jax.device_get(touched)), x_host)

    y_host = np.asarray(jax.device_get(y))
    touched_y = pallas_touch(y)               # padded path (64 elems -> 128)
    jax.block_until_ready(touched_y)
    assert touched_y.shape == y_host.shape and touched_y.dtype == jnp.float32
    assert np.allclose(np.asarray(jax.device_get(touched_y)), y_host)

    # --- Module forward: must return an empty list, like the PyTorch code. ----
    # (x and y were donated above; pass the touched copies instead.)
    model = ControlNot(preload=True)
    controls = model(touched, hint, timesteps, context, touched_y)
    jax.block_until_ready(controls)  # empty pytree; trivially ready
    assert controls == []
    assert model.be_half() is True
    assert model.on_cuda() is True

    print("KERNEL_OK")
</pallas_src>

<mosaic_0001>
module attributes {stable_mosaic.version = 11 : i64} {
  func.func @_touch_kernel(%arg0: i32, %arg1: memref<1x2048xf32, #tpu.memory_space<vmem>>, %arg2: memref<1x2048xf32, #tpu.memory_space<vmem>>) attributes {dimension_semantics = [#tpu.dimension_semantics<parallel>], iteration_bounds = array<i64: 1>, scalar_prefetch = 0 : i64, scratch_operands = 0 : i64, tpu.core_type = #tpu.core_type<tc>, window_params = [{transform_indices = @transform_0, window_bounds = array<i64: 1, 2048>}, {transform_indices = @transform_1, window_bounds = array<i64: 1, 2048>}]} {
    %c0 = arith.constant 0 : index
    %c0_0 = arith.constant 0 : index
    %0 = vector.load %arg1[%c0, %c0_0] : memref<1x2048xf32, #tpu.memory_space<vmem>>, vector<1x2048xf32>
    %c0_1 = arith.constant 0 : index
    %c0_2 = arith.constant 0 : index
    %1 = vector.load %arg2[%c0_1, %c0_2] : memref<1x2048xf32, #tpu.memory_space<vmem>>, vector<1x2048xf32>
    tpu.vector_store %arg2[%c0_1, %c0_2], %0 {strides = array<i32>} : memref<1x2048xf32, #tpu.memory_space<vmem>>, vector<1x2048xf32>,
    return
  }
  func.func @transform_0(%arg0: i32) -> (i32, i32) {
    %c0_i32 = arith.constant 0 : i32
    %c0_i32_0 = arith.constant 0 : i32
    return %arg0, %c0_i32 : i32, i32
  }
  func.func @transform_1(%arg0: i32) -> (i32, i32) {
    %c0_i32 = arith.constant 0 : i32
    %c0_i32_0 = arith.constant 0 : i32
    return %arg0, %c0_i32 : i32, i32
  }
}

</mosaic_0001>

<bundles_post_ra>
// kernel: pallas_touch.1
= control target key start
LH: loop header
LB: loop body
LE: loop exit
PB: predicated region body
PF: predicated region fallthrough
CT: control target
= control target key end

     0   :  { %s38_s0 = inlined_call_operand.vmem [shape: f32[1,2048], index: 0, kind: input, shape index: {}, may-alias: {0,1}]   ;;  %s39_s1 = inlined_call_operand.vmem [shape: f32[1,2048], index: 1, kind: output, shape index: {}, may-alias: {0,1}]  }
   0x1   :  { %v8_v0 = vld [vmem:[%s38_s0] sm:$0xff]  ;;  %v9_v1 = vld [vmem:[%s38_s0 + $0x8] sm:$0xff] }
   0x2   :  { %10 = vst [vmem:[%s39_s1] sm:$0xff] %v8_v0 }
   0x3   :  { %11 = vst [vmem:[%s39_s1 + $0x8] sm:$0xff] %v9_v1 }

</bundles_post_ra>
